<compile_context>
chip_gen: v5e
topology: v5e:2x2
jax: 0.10.0
libtpu: 0.0.40
codegen_flags: <defaults>
</compile_context>

<pallas_src>
import jax
import jax.numpy as jnp
from jax.experimental import pallas as pl
from jax.experimental.pallas import tpu as pltpu


LANE = 128  # TPU lane width; the batch axis lives on lanes in this kernel.


def _mlp_kernel(x_ref,
                w1_ref, b1_ref,
                w2_ref, b2_ref,
                w3_ref, b3_ref,
                w4_ref, b4_ref,
                o_ref):
    """ANN_V4 forward on one [features, batch_tile] slab (all weights resident)."""

    def layer(w_ref, b_ref, h_bf16):
        # bf16 x bf16 -> f32 accumulate on the MXU, f32 bias add on the VPU.
        acc = jnp.dot(w_ref[...], h_bf16, preferred_element_type=jnp.float32)
        return acc + b_ref[...]                      # [out_feat, batch_tile] f32

    h = x_ref[...]                                   # bf16 [F_in, bt]
    h = jnp.tanh(layer(w1_ref, b1_ref, h)).astype(jnp.bfloat16)
    h = jnp.tanh(layer(w2_ref, b2_ref, h)).astype(jnp.bfloat16)
    h = jnp.tanh(layer(w3_ref, b3_ref, h)).astype(jnp.bfloat16)
    out = layer(w4_ref, b4_ref, h)                   # final layer: no activation
    o_ref[...] = out.astype(o_ref.dtype)             # lane-dense [F_out, bt] store


def _pick_batch_tile(B):
    """Largest lane-aligned tile <= 1024 rows that gives >= 2 grid steps.

    >=2 steps => software pipelining of the x/out DMAs, and an even, >1 grid
    lets the 'parallel' batch axis shard across both v7x TensorCores.  The
    1024-row cap keeps double-buffered x/out tiles + live f32 intermediates
    well under v7x's 64 MiB VMEM.
    """
    for t in (1024, 512, 256, 128):
        if B % t == 0 and B // t >= 2:
            return t
    return B  # tiny batch: single full-array block (block dim == array dim is legal)


def ann_v4_forward(x, params, *, batch_tile=None):
    """x: [B, inputs] float32.  params: w_l [out, in] (bf16), b_l [out, 1] (f32)."""
    B, f_in = x.shape
    f_out = params["w4"].shape[0]

    if batch_tile is None:
        batch_tile = _pick_batch_tile(B)
    if batch_tile != B:
        assert B % batch_tile == 0, "batch_tile must divide the batch size"
        assert batch_tile % LANE == 0, (
            "batch_tile must be a multiple of 128 (lane width) when tiling the batch")
    grid = (B // batch_tile,)

    # [B, F_in] -> [F_in, B] with batch on lanes; bf16 feeds the MXU directly.
    x_t = x.T.astype(jnp.bfloat16)

    def pinned(arr):
        # Full-array block pinned to (0, 0): loaded once, never re-fetched.
        return pl.BlockSpec(arr.shape, lambda i: (0, 0))

    in_specs = [pl.BlockSpec((f_in, batch_tile), lambda i: (0, i))]
    for name in ("w1", "b1", "w2", "b2", "w3", "b3", "w4", "b4"):
        in_specs.append(pinned(params[name]))

    out_spec = pl.BlockSpec((f_out, batch_tile), lambda i: (0, i))

    fn = pl.pallas_call(
        _mlp_kernel,
        out_shape=jax.ShapeDtypeStruct((f_out, B), jnp.float32),
        grid_spec=pltpu.PrefetchScalarGridSpec(
            num_scalar_prefetch=0,
            grid=grid,
            in_specs=in_specs,
            out_specs=out_spec,
        ),
        compiler_params=pltpu.CompilerParams(
            dimension_semantics=("parallel",),      # batch tiles shard across v7x TCs
            vmem_limit_bytes=32 * 1024 * 1024,      # explicit, v7x-safe (usage ~1 MiB)
        ),
    )
    out_t = fn(x_t,
               params["w1"], params["b1"],
               params["w2"], params["b2"],
               params["w3"], params["b3"],
               params["w4"], params["b4"])
    return out_t.T  # back to [B, outputs]


def init_ann_v4_params(key, inputs, outputs):
    """nn.Linear-style init U(-1/sqrt(fan_in), 1/sqrt(fan_in)), PyTorch [out, in] layout.
    Weights stored bf16 (MXU operands), biases f32 (added to the f32 accumulator)."""
    dims = [(2 * inputs, inputs),
            (2 * inputs, 2 * inputs),
            (inputs, 2 * inputs),
            (outputs, inputs)]
    params = {}
    for idx, (fan_out, fan_in) in enumerate(dims, start=1):
        key, kw, kb = jax.random.split(key, 3)
        bound = 1.0 / float(fan_in) ** 0.5
        w = jax.random.uniform(kw, (fan_out, fan_in), jnp.float32,
                               minval=-bound, maxval=bound)
        b = jax.random.uniform(kb, (fan_out, 1), jnp.float32,
                               minval=-bound, maxval=bound)
        params[f"w{idx}"] = w.astype(jnp.bfloat16)
        params[f"b{idx}"] = b
    return params


def _reference_forward(x, params):
    """Pure-JAX reference with the same precision contract (bf16 ops, f32 acc)."""
    h = x.T.astype(jnp.bfloat16)
    for idx in (1, 2, 3):
        acc = jnp.dot(params[f"w{idx}"], h, preferred_element_type=jnp.float32)
        h = jnp.tanh(acc + params[f"b{idx}"]).astype(jnp.bfloat16)
    out = jnp.dot(params["w4"], h, preferred_element_type=jnp.float32) + params["b4"]
    return out.T


if __name__ == "__main__":
    # Small shapes consistent with the module; BATCH=512 -> batch_tile=256, grid=2
    # (pipelined, and an even grid so both v7x TensorCores are engaged).
    # NOTE: at very small batches (e.g. 8) the call is pure launch overhead —
    # batch requests into one large-B call in deployment.
    INPUTS, OUTPUTS, BATCH = 16, 4, 512

    key = jax.random.PRNGKey(0)
    kx, kp = jax.random.split(key)
    x = jax.random.normal(kx, (BATCH, INPUTS), dtype=jnp.float32)
    params = init_ann_v4_params(kp, INPUTS, OUTPUTS)

    out = ann_v4_forward(x, params)
    out = jax.block_until_ready(out)

    ref = _reference_forward(x, params)
    assert out.shape == (BATCH, OUTPUTS)
    assert jnp.allclose(out, ref, atol=2e-2, rtol=2e-2), "mismatch vs pure-JAX reference"

    print("KERNEL_OK")
</pallas_src>

<mosaic_0001>
module attributes {stable_mosaic.version = 11 : i64} {
  func.func @_mlp_kernel(%arg0: i32, %arg1: memref<16x256xbf16, #tpu.memory_space<vmem>>, %arg2: memref<32x16xbf16, #tpu.memory_space<vmem>>, %arg3: memref<32x1xf32, #tpu.memory_space<vmem>>, %arg4: memref<32x32xbf16, #tpu.memory_space<vmem>>, %arg5: memref<32x1xf32, #tpu.memory_space<vmem>>, %arg6: memref<16x32xbf16, #tpu.memory_space<vmem>>, %arg7: memref<16x1xf32, #tpu.memory_space<vmem>>, %arg8: memref<4x16xbf16, #tpu.memory_space<vmem>>, %arg9: memref<4x1xf32, #tpu.memory_space<vmem>>, %arg10: memref<4x256xf32, #tpu.memory_space<vmem>>) attributes {dimension_semantics = [#tpu.dimension_semantics<parallel>], iteration_bounds = array<i64: 2>, scalar_prefetch = 0 : i64, scratch_operands = 0 : i64, tpu.core_type = #tpu.core_type<tc>, window_params = [{transform_indices = @transform_0, window_bounds = array<i64: 16, 256>}, {pipeline_mode = #tpu.pipeline_mode<synchronous>, transform_indices = @transform_1, window_bounds = array<i64: 32, 16>}, {pipeline_mode = #tpu.pipeline_mode<synchronous>, transform_indices = @transform_2, window_bounds = array<i64: 32, 1>}, {pipeline_mode = #tpu.pipeline_mode<synchronous>, transform_indices = @transform_3, window_bounds = array<i64: 32, 32>}, {pipeline_mode = #tpu.pipeline_mode<synchronous>, transform_indices = @transform_4, window_bounds = array<i64: 32, 1>}, {pipeline_mode = #tpu.pipeline_mode<synchronous>, transform_indices = @transform_5, window_bounds = array<i64: 16, 32>}, {pipeline_mode = #tpu.pipeline_mode<synchronous>, transform_indices = @transform_6, window_bounds = array<i64: 16, 1>}, {pipeline_mode = #tpu.pipeline_mode<synchronous>, transform_indices = @transform_7, window_bounds = array<i64: 4, 16>}, {pipeline_mode = #tpu.pipeline_mode<synchronous>, transform_indices = @transform_8, window_bounds = array<i64: 4, 1>}, {transform_indices = @transform_9, window_bounds = array<i64: 4, 256>}]} {
    %c0 = arith.constant 0 : index
    %c0_0 = arith.constant 0 : index
    %0 = vector.load %arg1[%c0, %c0_0] : memref<16x256xbf16, #tpu.memory_space<vmem>>, vector<16x256xbf16>
    %c0_1 = arith.constant 0 : index
    %c0_2 = arith.constant 0 : index
    %1 = vector.load %arg2[%c0_1, %c0_2] : memref<32x16xbf16, #tpu.memory_space<vmem>>, vector<32x16xbf16>
    %cst = arith.constant dense<0.000000e+00> : vector<32x256xf32>
    %2 = tpu.matmul %1, %0, %cst {dimension_numbers = #tpu.dot_dimension_numbers<[1], [0], [0], [1], [0, 0, 1, 1], [], []>} : vector<32x16xbf16>, vector<16x256xbf16>, vector<32x256xf32> -> vector<32x256xf32>
    %c0_3 = arith.constant 0 : index
    %c0_4 = arith.constant 0 : index
    %3 = vector.load %arg3[%c0_3, %c0_4] : memref<32x1xf32, #tpu.memory_space<vmem>>, vector<32x1xf32>
    %4 = vector.broadcast %3 : vector<32x1xf32> to vector<32x256xf32>
    %5 = arith.addf %2, %4 : vector<32x256xf32>
    %6 = math.tanh %5 : vector<32x256xf32>
    %7 = arith.truncf %6 : vector<32x256xf32> to vector<32x256xbf16>
    %c0_5 = arith.constant 0 : index
    %c0_6 = arith.constant 0 : index
    %8 = vector.load %arg4[%c0_5, %c0_6] : memref<32x32xbf16, #tpu.memory_space<vmem>>, vector<32x32xbf16>
    %cst_7 = arith.constant dense<0.000000e+00> : vector<32x256xf32>
    %9 = tpu.matmul %8, %7, %cst_7 {dimension_numbers = #tpu.dot_dimension_numbers<[1], [0], [0], [1], [0, 0, 1, 1], [], []>} : vector<32x32xbf16>, vector<32x256xbf16>, vector<32x256xf32> -> vector<32x256xf32>
    %c0_8 = arith.constant 0 : index
    %c0_9 = arith.constant 0 : index
    %10 = vector.load %arg5[%c0_8, %c0_9] : memref<32x1xf32, #tpu.memory_space<vmem>>, vector<32x1xf32>
    %11 = vector.broadcast %10 : vector<32x1xf32> to vector<32x256xf32>
    %12 = arith.addf %9, %11 : vector<32x256xf32>
    %13 = math.tanh %12 : vector<32x256xf32>
    %14 = arith.truncf %13 : vector<32x256xf32> to vector<32x256xbf16>
    %c0_10 = arith.constant 0 : index
    %c0_11 = arith.constant 0 : index
    %15 = vector.load %arg6[%c0_10, %c0_11] : memref<16x32xbf16, #tpu.memory_space<vmem>>, vector<16x32xbf16>
    %cst_12 = arith.constant dense<0.000000e+00> : vector<16x256xf32>
    %16 = tpu.matmul %15, %14, %cst_12 {dimension_numbers = #tpu.dot_dimension_numbers<[1], [0], [0], [1], [0, 0, 1, 1], [], []>} : vector<16x32xbf16>, vector<32x256xbf16>, vector<16x256xf32> -> vector<16x256xf32>
    %c0_13 = arith.constant 0 : index
    %c0_14 = arith.constant 0 : index
    %17 = vector.load %arg7[%c0_13, %c0_14] : memref<16x1xf32, #tpu.memory_space<vmem>>, vector<16x1xf32>
    %18 = vector.broadcast %17 : vector<16x1xf32> to vector<16x256xf32>
    %19 = arith.addf %16, %18 : vector<16x256xf32>
    %20 = math.tanh %19 : vector<16x256xf32>
    %21 = arith.truncf %20 : vector<16x256xf32> to vector<16x256xbf16>
    %c0_15 = arith.constant 0 : index
    %c0_16 = arith.constant 0 : index
    %22 = vector.load %arg8[%c0_15, %c0_16] : memref<4x16xbf16, #tpu.memory_space<vmem>>, vector<4x16xbf16>
    %cst_17 = arith.constant dense<0.000000e+00> : vector<4x256xf32>
    %23 = tpu.matmul %22, %21, %cst_17 {dimension_numbers = #tpu.dot_dimension_numbers<[1], [0], [0], [1], [0, 0, 1, 1], [], []>} : vector<4x16xbf16>, vector<16x256xbf16>, vector<4x256xf32> -> vector<4x256xf32>
    %c0_18 = arith.constant 0 : index
    %c0_19 = arith.constant 0 : index
    %24 = vector.load %arg9[%c0_18, %c0_19] : memref<4x1xf32, #tpu.memory_space<vmem>>, vector<4x1xf32>
    %25 = vector.broadcast %24 : vector<4x1xf32> to vector<4x256xf32>
    %26 = arith.addf %23, %25 : vector<4x256xf32>
    %c0_20 = arith.constant 0 : index
    %c0_21 = arith.constant 0 : index
    %27 = vector.load %arg10[%c0_20, %c0_21] : memref<4x256xf32, #tpu.memory_space<vmem>>, vector<4x256xf32>
    tpu.vector_store %arg10[%c0_20, %c0_21], %26 {strides = array<i32>} : memref<4x256xf32, #tpu.memory_space<vmem>>, vector<4x256xf32>,
    return
  }
  func.func @transform_0(%arg0: i32) -> (i32, i32) {
    %c0_i32 = arith.constant 0 : i32
    %c0_i32_0 = arith.constant 0 : i32
    return %c0_i32, %arg0 : i32, i32
  }
  func.func @transform_1(%arg0: i32) -> (i32, i32) {
    %c0_i32 = arith.constant 0 : i32
    %c0_i32_0 = arith.constant 0 : i32
    %c0_i32_1 = arith.constant 0 : i32
    return %c0_i32, %c0_i32_0 : i32, i32
  }
  func.func @transform_2(%arg0: i32) -> (i32, i32) {
    %c0_i32 = arith.constant 0 : i32
    %c0_i32_0 = arith.constant 0 : i32
    %c0_i32_1 = arith.constant 0 : i32
    return %c0_i32, %c0_i32_0 : i32, i32
  }
  func.func @transform_3(%arg0: i32) -> (i32, i32) {
    %c0_i32 = arith.constant 0 : i32
    %c0_i32_0 = arith.constant 0 : i32
    %c0_i32_1 = arith.constant 0 : i32
    return %c0_i32, %c0_i32_0 : i32, i32
  }
  func.func @transform_4(%arg0: i32) -> (i32, i32) {
    %c0_i32 = arith.constant 0 : i32
    %c0_i32_0 = arith.constant 0 : i32
    %c0_i32_1 = arith.constant 0 : i32
    return %c0_i32, %c0_i32_0 : i32, i32
  }
  func.func @transform_5(%arg0: i32) -> (i32, i32) {
    %c0_i32 = arith.constant 0 : i32
    %c0_i32_0 = arith.constant 0 : i32
    %c0_i32_1 = arith.constant 0 : i32
    return %c0_i32, %c0_i32_0 : i32, i32
  }
  func.func @transform_6(%arg0: i32) -> (i32, i32) {
    %c0_i32 = arith.constant 0 : i32
    %c0_i32_0 = arith.constant 0 : i32
    %c0_i32_1 = arith.constant 0 : i32
    return %c0_i32, %c0_i32_0 : i32, i32
  }
  func.func @transform_7(%arg0: i32) -> (i32, i32) {
    %c0_i32 = arith.constant 0 : i32
    %c0_i32_0 = arith.constant 0 : i32
    %c0_i32_1 = arith.constant 0 : i32
    return %c0_i32, %c0_i32_0 : i32, i32
  }
  func.func @transform_8(%arg0: i32) -> (i32, i32) {
    %c0_i32 = arith.constant 0 : i32
    %c0_i32_0 = arith.constant 0 : i32
    %c0_i32_1 = arith.constant 0 : i32
    return %c0_i32, %c0_i32_0 : i32, i32
  }
  func.func @transform_9(%arg0: i32) -> (i32, i32) {
    %c0_i32 = arith.constant 0 : i32
    %c0_i32_0 = arith.constant 0 : i32
    return %c0_i32, %arg0 : i32, i32
  }
}

</mosaic_0001>

<bundles_post_ra>
// kernel: tpu_custom_call.1
= control target key start
LH: loop header
LB: loop body
LE: loop exit
PB: predicated region body
PF: predicated region fallthrough
CT: control target
= control target key end

     0   :  { %14 = vsyncpa [#allocation4], 0  ;;  %s1176_s0 = inlined_call_operand.vmem [shape: bf16[16,512], index: 0, kind: input, shape index: {}]   ;;  %s1177_s1 = inlined_call_operand.vmem [shape: bf16[32,16], index: 1, kind: input, shape index: {}]   ;;  %s1178_s2 = inlined_call_operand.vmem [shape: f32[32,1], index: 2, kind: input, shape index: {}]   ;;  %s1179_s3 = inlined_call_operand.vmem [shape: bf16[32,32], index: 3, kind: input, shape index: {}]   ;;  %s1180_s4 = inlined_call_operand.vmem [shape: f32[32,1], index: 4, kind: input, shape index: {}]   ;;  %s1181_s5 = inlined_call_operand.vmem [shape: bf16[16,32], index: 5, kind: input, shape index: {}]   ;;  %s1182_s6 = inlined_call_operand.vmem [shape: f32[16,1], index: 6, kind: input, shape index: {}]   ;;  %s1183_s7 = inlined_call_operand.vmem [shape: bf16[4,16], index: 7, kind: input, shape index: {}]   ;;  %s1184_s8 = inlined_call_operand.vmem [shape: f32[4,1], index: 8, kind: input, shape index: {}]   ;;  %s1185_s9 = inlined_call_operand.hbm [shape: f32[4,512], index: 9, kind: output, shape index: {}]  }
   0x1   :  { %16 = vsyncpa [#allocation4 + $0x1], 0  ;;  %s1018_s30 = smov 0   ;;  %s1020_s10 = smov 0  }
   0x2   :  { %s1022_s11 = smov 0   ;;  %s1024_s12 = smov 0  }
   0x3 LB: > { %s756_s13 = sadd.s32 4294967295, %s965_s12   ;;  %s757_s14 = sadd.s32 4294967294, %s965_s12   ;;  %s965_s12 = sphi %s1024_s12, %s1191_s12   ;;  %s961_s11 = sphi %s1022_s11, %s1190_s11   ;;  %s957_s10 = sphi %s1020_s10, %s1189_s10   ;;  %s953_s30 = sphi %s1018_s30, %s1188_s30  }
   0x4   : > { %s1041_s15 = sadd.s32 1, %s965_s12   ;;  %s29_s16 = sadd.s32 1, %s961_s11 }
   0x5   : > { %s26_s17 = ssub.s32 %s965_s12, %s1041_s15  ;;  %p36_p0 = scmp.ne.s32.totalorder %s961_s11, %s957_s10 }
   0x6   : > { %p27_p1 = scmp.eq.s32.totalorder %s26_s17, 0  ;;  %p37_p2 = scmp.eq.s32.totalorder %s965_s12, 0 }
   0x7   : > { %p234_p3 = scmp.eq.s32.totalorder %s756_s13, 1  ;;  %p239_p4 = scmp.ne.s32.totalorder %s957_s10, %s953_s30 }
   0x8   : > { %s1054_s18 = scalar_select %p27_p1, %s961_s11, %s29_s16  }
   0x9   : > { %p38_p5 = por %p37_p2, %p36_p0  ;;  %p1056_p6 = por %p234_p3, %p36_p0 }
   0xa   : > { %p240_p7 = scmp.eq.s32.totalorder %s757_s14, 1  ;;  %p759_p9 = scmp.ge.s32.totalorder %s965_s12, 2 }
   0xc   : > { %p1060_p8 = por %p240_p7, %p239_p4  ;;  %280 = sbr.rel (%p759_p9) target bundleno = 23 (0x17), region = 48 }
  0x11   : > { %283 = sbr.rel (!%p38_p5) target bundleno = 23 (0x17), region = 52  ;;  %s285_s21 = sand.u32 (%p38_p5), 1, %s961_s11  }
  0x12   : > { %s811_s22 = sshll.u32 (%p38_p5), %s965_s12, 3  ;;  %s760_s23 = sshll.u32 (%p38_p5), %s285_s21, 4 }
  0x13   : > { %s290_s26 = scalar_lea.vmem (%p38_p5), %s1176_s0, %s811_s22  ;;  %s287_s27 = scalar_lea.vmem (%p38_p5), [#allocation2], %s760_s23 }
  0x14   : > { %v321_v0 = vld [vmem:[%s290_s26] sm:$0xff] (%p38_p5)  ;;  %v323_v1 = vld [vmem:[%s290_s26 + $0x10] sm:$0xff] (%p38_p5) }
  0x15   : > { %322 = vst [vmem:[%s287_s27] sm:$0xff] (%p38_p5), %v321_v0 }
  0x16   : > { %324 = vst [vmem:[%s287_s27 + $0x8] sm:$0xff] %v323_v1 }
  0x17 PF: > { %p763_p10 = scmp.ge.s32.totalorder %s965_s12, 1  ;;  %p329_p11 = scmp.lt.s32.totalorder %s965_s12, 3 }
  0x19   : > { %p330_p12 = pnand %p763_p10, %p329_p11 }
  0x1a   : > { %s1075_s28 = sand.u32 (!%p330_p12), 1, %s957_s10  }
  0x1b   : > { %333 = sbr.rel (%p330_p12) target bundleno = 671 (0x29f), region = 90  ;;  %s764_s21 = sshll.u32 (!%p330_p12), %s1075_s28, 4 }
  0x1c   : > { %s338_s22 = scalar_lea.vmem (!%p330_p12), [#allocation2], %s764_s21  ;;  %s765_s17 = sshll.u32 (!%p330_p12), %s1075_s28, 3 }
  0x1d   : > { %s819_s21 = sshll.u32 (!%p330_p12), %s756_s13, 3  ;;  %s370_s25 = scalar_lea.vmem (!%p330_p12), [#allocation3], %s765_s17 }
  0x1e   : > { %s687_s24 = scalar_lea.hbm (!%p330_p12), %s1185_s9, %s819_s21  ;;  %s689_s26 = sshll.u32 (!%p330_p12), %s370_s25, 4  ;;  %s690_s26 = int_to_ptr.vmem [resolvable:$true] %s689_s26 }
  0x1f   : > { %s691_s27 = sshll.u32 (!%p330_p12), %s687_s24, 4  ;;  %s676_s13 = scalar_lea.sflag (!%p330_p12), [#allocation4], %s1075_s28  ;;  %s692_s27 = int_to_ptr.hbm [resolvable:$true] %s691_s27 }
  0x20   : > { %v382_v2 = vld [vmem:[%s1178_s2 + $0x10] sm:$0xff]  ;;  %v380_v3 = vld [vmem:[%s1178_s2] sm:$0xff]  ;;  %v967_v4 = vmov 0   ;;  %v813_v6 = vld [vmem:[%s338_s22 + $0x4] sm:$0xf0]  ;;  %vm424_vm0 = vcmask 130048  }
  0x21   : > { %860 = vset.pattern.permute.xlu0 %v967_v4  ;;  %861 = vset.pattern.permute.xlu1 %v967_v4  ;;  %v776_v5 = vld [vmem:[%s338_s22] sm:$0xf]  ;;  %v812_v7 = vld [vmem:[%s338_s22 + $0x4] sm:$0xf]  ;;  %v778_v9 = vld [vmem:[%s338_s22 + $0x8] sm:$0xf0] }
  0x22   : > { %396 = vperm.xlu0 %860, %v382_v2   ;;  %386 = vperm.xlu1 %861, %v380_v3   ;;  %v777_v8 = vor.u32 %v813_v6, %v776_v5  ;;  %v781_v10 = vor.u32 %v812_v7, %v778_v9  ;;  %v814_v11 = vld [vmem:[%s1177_s1] sm:$0xff]  ;;  %v383_v12 = vld [vmem:[%s1178_s2 + $0x18] sm:$0xff]  ;;  %v381_v13 = vld [vmem:[%s1178_s2 + $0x8] sm:$0xff]  ;;  %vm519_vm1 = vcmask 261120   ;;  %vm671_vm2 = vcmask 1043456   ;;  %s917_s29 = sshra.s32 %s692_s27, 4  ;;  %s918_s29 = int_to_ptr.hbm [resolvable:$true] %s917_s29 }
  0x23   : > { %862 = vset.pattern.permute.xlu2 %v967_v4  ;;  %v485_v14 = vld [vmem:[%s1180_s4] sm:$0xff]  ;;  %v486_v15 = vld [vmem:[%s1180_s4 + $0x8] sm:$0xff]  ;;  %v487_v39 = vld [vmem:[%s1180_s4 + $0x10] sm:$0xff]  ;;  %s919_s14 = scalar_lea.hbm %s918_s29, 8  ;;  %s923_s21 = scalar_lea.hbm %s1185_s9, 16 }
  0x24   : > { %438 = vmatpush.bf16.msra.mxu0 %v777_v8  ;;  %457 = vmatpush.bf16.msra.mxu1 %v781_v10  ;;  %v815_v16 = vld [vmem:[%s1177_s1 + $0x8] sm:$0xff]  ;;  %v633_v18 = vld [vmem:[%s1184_s8] sm:$0xf]  ;;  %v488_v45 = vld [vmem:[%s1180_s4 + $0x18] sm:$0xff]  ;;  %p920_p13 = scmp.ne.s32.totalorder %s918_s29, %s919_s14  ;;  %p924_p2 = scmp.lt.s32.totalorder %s918_s29, %s1185_s9 }
  0x25   : > { %v579_v17 = vld [vmem:[%s1182_s6 + $0x8] sm:$0xff]  ;;  %501 = vperm.xlu2 %862, %v487_v39   ;;  %v816_v53 = vld [vmem:[%s1179_s3] sm:$0xff]  ;;  %p925_p3 = scmp.lt.s32.totalorder %s923_s21, %s919_s14 }
  0x26   : > { %v578_v54 = vld [vmem:[%s1182_s6] sm:$0xff]  ;;  %v817_v55 = vld [vmem:[%s1179_s3 + $0x8] sm:$0xff]  ;;  %p921_p0 = pnand %p920_p13, %p1056_p6 }
  0x27   : > { %782 = vmatmul.msk.bf16.vlgmr.msra.gmra.mxu0 %vm424_vm0, %v814_v11  ;;  %784 = vmatmul.msk.bf16.vlgmr.msra.gmra.mxu1 %vm424_vm0, %v814_v11  ;;  %p926_p4 = por %p925_p3, %p924_p2 }
  0x28   : > { %p922_p1 = pneg %p921_p0 }
  0x2a   : > { %401 = vperm.xlu0 %860, %v383_v12   ;;  %391 = vperm.xlu1 %861, %v381_v13   ;;  %p927_p5 = pnand %p926_p4, %p922_p1 }
  0x2d   : > { %506 = vperm.xlu2 %862, %v488_v45  }
  0x32   : > { %491 = vperm.xlu0 %860, %v485_v14   ;;  %496 = vperm.xlu1 %861, %v486_v15  }
  0x35   : > { %582 = vperm.xlu2 %862, %v578_v54  }
  0x37   : > { %783 = vmatmul.msk.bf16.gmra.mxu0 %vm424_vm0, %v815_v16  ;;  %785 = vmatmul.msk.bf16.gmra.mxu1 %vm424_vm0, %v815_v16 }
  0x3a   : > { %587 = vperm.xlu0 %860, %v579_v17   ;;  %636 = vperm.xlu1 %861, %v633_v18  }
  0x7f   : > { %v502_v60 = vpop.permute.xlu2 %501 }
  0x87   : > { %v507_v2 = vpop.permute.xlu2 %506 }
  0x94   : > { %v397_v23 = vpop.permute.xlu0 %396  ;;  %v387_v24 = vpop.permute.xlu1 %386 }
  0x9c   : > { %v402_v29 = vpop.permute.xlu0 %401  ;;  %v392_v30 = vpop.permute.xlu1 %391 }
  0xa4   : > { %v440_v19 = vpop.f32.mrf.mxu0  ;;  %v459_v20 = vpop.f32.mrf.mxu1 }
  0xa5   : > { %v441_v37 = vadd.f32 %v440_v19, %v387_v24  ;;  %v460_v38 = vadd.f32 %v459_v20, %v387_v24  ;;  %v497_v1 = vpop.permute.xlu1 %496  ;;  %v492_v7 = vpop.permute.xlu0 %491  ;;  %v818_v24 = vld [vmem:[%s1181_s5] sm:$0xff] }
  0xac   : > { %v442_v21 = vpop.f32.mrf.mxu0  ;;  %v461_v22 = vpop.f32.mrf.mxu1 }
  0xad   : > { %v443_v32 = vadd.f32 %v442_v21, %v392_v30  ;;  %v462_v35 = vadd.f32 %v461_v22, %v392_v30  ;;  %v588_v30 = vpop.permute.xlu0 %587 }
  0xb4   : > { %v445_v25 = vpop.f32.mrf.mxu0  ;;  %v464_v26 = vpop.f32.mrf.mxu1 }
  0xb5   : > { %v446_v27 = vadd.f32 %v445_v25, %v397_v23  ;;  %v465_v28 = vadd.f32 %v464_v26, %v397_v23 }
  0xb7   : > { %863 = vtanh.f32 %v446_v27  ;;  %v583_v27 = vpop.permute.xlu2 %582 }
  0xb8   : > { %865 = vtanh.f32 %v465_v28 }
  0xbc   : > { %v447_v31 = vpop.f32.mrf.mxu0  ;;  %v466_v34 = vpop.f32.mrf.mxu1 }
  0xbd   : > { %v448_v33 = vadd.f32 %v447_v31, %v402_v29  ;;  %v467_v36 = vadd.f32 %v466_v34, %v402_v29  ;;  %v864_v40 = vpop.eup %863 }
  0xbe   : > { %v866_v41 = vpop.eup %865 }
  0xbf   : > { %867 = vtanh.f32 %v448_v33 }
  0xc0   : > { %869 = vtanh.f32 %v467_v36 }
  0xc1   : > { %871 = vtanh.f32 %v443_v32 }
  0xc2   : > { %873 = vtanh.f32 %v462_v35 }
  0xc3   : > { %875 = vtanh.f32 %v441_v37 }
  0xc4   : > { %877 = vtanh.f32 %v460_v38 }
  0xc5   : > { %v868_v42 = vpop.eup %867 }
  0xc6   : > { %v870_v43 = vpop.eup %869  ;;  %v479_v44 = vpack.c.bf16 %v868_v42, %v864_v40 }
  0xc7   : > { %v872_v46 = vpop.eup %871  ;;  %v480_v47 = vpack.c.bf16 %v870_v43, %v866_v41  ;;  %v632_v41 = vld [vmem:[%s1183_s7] sm:$0x3]  ;;  %v637_v43 = vpop.permute.xlu1 %636 }
  0xc8   : > { %v874_v48 = vpop.eup %873  ;;  %532 = vmatpush.bf16.msra.mxu2 %v479_v44 }
  0xc9   : > { %v876_v49 = vpop.eup %875  ;;  %551 = vmatpush.bf16.msra.mxu3 %v480_v47 }
  0xca   : > { %v878_v50 = vpop.eup %877  ;;  %v477_v51 = vpack.c.bf16 %v872_v46, %v876_v49 }
  0xcb   : > { %v478_v52 = vpack.c.bf16 %v874_v48, %v878_v50 }
  0xcc   : > { %533 = vmatpush.bf16.msra.mxu2 %v477_v51 }
  0xcd   : > { %552 = vmatpush.bf16.msra.mxu3 %v478_v52 }
  0xcf   : > { %794 = vmatmul.msk.bf16.vlgmr.msra.gmra.mxu2 %vm519_vm1, %v816_v53 }
  0xd0   : > { %796 = vmatmul.msk.bf16.vlgmr.msra.gmra.mxu3 %vm519_vm1, %v816_v53 }
  0xdf   : > { %795 = vmatmul.msk.bf16.gmra.mxu2 %vm519_vm1, %v817_v55 }
  0xe0   : > { %797 = vmatmul.msk.bf16.gmra.mxu3 %vm519_vm1, %v817_v55 }
 0x152   : > { %v535_v56 = vpop.f32.mrf.mxu2 }
 0x153   : > { %v554_v57 = vpop.f32.mrf.mxu3  ;;  %v536_v10 = vadd.f32 %v535_v56, %v492_v7 }
 0x154   : > { %v555_v11 = vadd.f32 %v554_v57, %v492_v7 }
 0x15a   : > { %v537_v58 = vpop.f32.mrf.mxu2 }
 0x15b   : > { %v556_v59 = vpop.f32.mrf.mxu3  ;;  %v538_v4 = vadd.f32 %v537_v58, %v497_v1 }
 0x15c   : > { %v557_v8 = vadd.f32 %v556_v59, %v497_v1 }
 0x162   : > { %v540_v61 = vpop.f32.mrf.mxu2 }
 0x163   : > { %v559_v62 = vpop.f32.mrf.mxu3  ;;  %v541_v63 = vadd.f32 %v540_v61, %v502_v60 }
 0x164   : > { %v560_v0 = vadd.f32 %v559_v62, %v502_v60 }
 0x165   : > { %879 = vtanh.f32 %v541_v63 }
 0x166   : > { %881 = vtanh.f32 %v560_v0 }
 0x16a   : > { %v542_v3 = vpop.f32.mrf.mxu2 }
 0x16b   : > { %v543_v5 = vadd.f32 %v542_v3, %v507_v2  ;;  %v561_v6 = vpop.f32.mrf.mxu3  ;;  %v880_v12 = vpop.eup %879 }
 0x16c   : > { %v562_v9 = vadd.f32 %v561_v6, %v507_v2  ;;  %v882_v13 = vpop.eup %881 }
 0x16d   : > { %883 = vtanh.f32 %v543_v5 }
 0x16e   : > { %885 = vtanh.f32 %v562_v9 }
 0x16f   : > { %887 = vtanh.f32 %v538_v4 }
 0x170   : > { %889 = vtanh.f32 %v557_v8 }
 0x171   : > { %891 = vtanh.f32 %v536_v10 }
 0x172   : > { %893 = vtanh.f32 %v555_v11 }
 0x173   : > { %v884_v14 = vpop.eup %883 }
 0x174   : > { %v886_v15 = vpop.eup %885  ;;  %v574_v16 = vpack.c.bf16 %v884_v14, %v880_v12 }
 0x175   : > { %v888_v17 = vpop.eup %887  ;;  %v575_v18 = vpack.c.bf16 %v886_v15, %v882_v13 }
 0x176   : > { %v890_v19 = vpop.eup %889  ;;  %604 = vmatpush.bf16.msrb.mxu0 %v574_v16 }
 0x177   : > { %v892_v20 = vpop.eup %891  ;;  %618 = vmatpush.bf16.msrb.mxu1 %v575_v18 }
 0x178   : > { %v894_v21 = vpop.eup %893  ;;  %v572_v22 = vpack.c.bf16 %v888_v17, %v892_v20 }
 0x179   : > { %v573_v23 = vpack.c.bf16 %v890_v19, %v894_v21 }
 0x17a   : > { %605 = vmatpush.bf16.msrb.mxu0 %v572_v22 }
 0x17b   : > { %619 = vmatpush.bf16.msrb.mxu1 %v573_v23 }
 0x17d   : > { %802 = vmatmul.msk.bf16.vlgmr.msrb.gmra.mxu0 %vm519_vm1, %v818_v24 }
 0x17e   : > { %803 = vmatmul.msk.bf16.vlgmr.msrb.gmra.mxu1 %vm519_vm1, %v818_v24 }
 0x1fa   : > { %v607_v25 = vpop.f32.mrf.mxu0 }
 0x1fb   : > { %v621_v26 = vpop.f32.mrf.mxu1  ;;  %v608_v28 = vadd.f32 %v607_v25, %v583_v27 }
 0x1fc   : > { %v622_v29 = vadd.f32 %v621_v26, %v583_v27 }
 0x1fd   : > { %895 = vtanh.f32 %v608_v28 }
 0x1fe   : > { %897 = vtanh.f32 %v622_v29 }
 0x202   : > { %v609_v31 = vpop.f32.mrf.mxu0 }
 0x203   : > { %v610_v32 = vadd.f32 %v609_v31, %v588_v30  ;;  %v623_v33 = vpop.f32.mrf.mxu1  ;;  %v896_v35 = vpop.eup %895 }
 0x204   : > { %v624_v34 = vadd.f32 %v623_v33, %v588_v30  ;;  %v898_v36 = vpop.eup %897 }
 0x205   : > { %899 = vtanh.f32 %v610_v32 }
 0x206   : > { %901 = vtanh.f32 %v624_v34 }
 0x20b   : > { %v900_v37 = vpop.eup %899 }
 0x20c   : > { %v902_v38 = vpop.eup %901  ;;  %v630_v39 = vpack.c.bf16 %v900_v37, %v896_v35 }
 0x20d   : > { %v631_v40 = vpack.c.bf16 %v902_v38, %v898_v36 }
 0x20e   : > { %649 = vmatpush.bf16.msrb.mxu2 %v630_v39 }
 0x20f   : > { %662 = vmatpush.bf16.msrb.mxu3 %v631_v40 }
 0x211   : > { %804 = vmatmul.msk.bf16.vlgmr.msrb.gmra.mxu2 %vm424_vm0, %v632_v41 }
 0x212   : > { %805 = vmatmul.msk.bf16.vlgmr.msrb.gmra.mxu3 %vm424_vm0, %v632_v41 }
 0x294   : > { %v651_v42 = vpop.f32.mrf.mxu2 }
 0x295   : > { %v664_v44 = vpop.f32.mrf.mxu3  ;;  %v652_v46 = vadd.f32 %v651_v42, %v637_v43 }
 0x296   : > { %v665_v45 = vadd.f32 %v664_v44, %v637_v43 }
 0x298   : > { %v670_v47 = vrot.slane %v665_v45, 4 }
 0x29a   : > { %v672_v48 = vsel %vm671_vm2, %v652_v46, %v670_v47 }
 0x29b   : > { %674 = vst [vmem:[%s370_s25] sm:$0xff] %v672_v48 }
 0x29c   : > { %v653_v49 = vpop.f32.mrf.mxu2 }
 0x29d   : > { %930 = shalt.err (!%p927_p5)
}
 0x29e   : > { %820 = dma.vmem_to_hbm [thread:$0]  (%p1056_p6), %s690_s26, 128, %s692_s27, %s676_s13   ;;  %v666_v50 = vpop.f32.mrf.mxu3 }
 0x29f PF: > { %s703_s28 = sand.u32 1, %s953_s30   ;;  %p823_p7 = pnand %p759_p9, %p1060_p8 }
 0x2a0   : > { %s704_s24 = scalar_lea.sflag [#allocation4], %s703_s28 }
 0x2a1   : > { %p824_p10 = pneg %p823_p7 }
 0x2a3   : > { %948 = dma.done.wait (%p824_p10), %s704_s24, 128  }
 0x2a4   : > { %950 = vsyncadd (%p824_p10), %s704_s24, 4294967168  ;;  %p19_p11 = scmp.ge.s32.totalorder %s1041_s15, 4   ;;  %s1188_s30 = smov %s957_s10 }
 0x2a5   : > { %s1189_s10 = smov %s961_s11  ;;  %s1190_s11 = smov %s1054_s18 }
 0x2a6   : > { %s1191_s12 = smov %s1041_s15  ;;  %21 = sbr.rel (!%p19_p11) target bundleno = 3 (0x3), region = 134 }
 0x2ab   :  { %710 = vsyncpa [#allocation4], 1 }
 0x2ac   :  { %712 = vsyncpa [#allocation4 + $0x1], 1 }

</bundles_post_ra>
